<compile_context>
chip_gen: v6e
topology: v6e:2x2x1
jax: 0.10.0
libtpu: 0.0.40
codegen_flags: <defaults>
</compile_context>

<pallas_src>
import functools

import jax
import jax.numpy as jnp
from jax import lax
from jax.experimental import pallas as pl
from jax.experimental.pallas import tpu as pltpu


def _loss_kernel(pred_ref, tpad_ref, out_ref, *, H, W, K, BB, N, need_mask, inv_k2):
    P = K // 2
    Wpad = tpad_ref.shape[-1]

    # ---- log_softmax over dim=-1 (W), per channel (keeps the f32 live set small) ----
    def log_softmax(x):
        m = jnp.max(x, axis=-1, keepdims=True)
        return x - (m + jnp.log(jnp.sum(jnp.exp(x - m), axis=-1, keepdims=True)))

    logp0 = log_softmax(pred_ref[:, 0, :, :].astype(jnp.float32))   # (BB, H, W)
    logp1 = log_softmax(pred_ref[:, 1, :, :].astype(jnp.float32))   # (BB, H, W)

    # ---- separable box blur of the pre-padded target ----
    # Row (sublane) sum: K sublane-offset reads of the (BB, H+2P, Wpad) bf16 block.
    rowsum = tpad_ref[:, 0:H, :].astype(jnp.float32)                # (BB, H, Wpad)
    for a in range(1, K):
        rowsum = rowsum + tpad_ref[:, a:a + H, :].astype(jnp.float32)
    # Lane sum as a banded-ones matmul on the (otherwise idle) MXU: avoids K
    # lane-misaligned slices / shifted VMEM copies, and the result is already
    # aligned to lane 0.  band[j, w] = 1 iff |j - w| <= P and j < W.
    j = lax.broadcasted_iota(jnp.int32, (Wpad, W), 0)
    w = lax.broadcasted_iota(jnp.int32, (Wpad, W), 1)
    band = ((jnp.abs(j - w) <= P) & (j < W)).astype(jnp.float32)
    blur = jnp.dot(rowsum.reshape(BB * H, Wpad), band,
                   preferred_element_type=jnp.float32).reshape(BB, H, W)

    # ---- -(1-s)*logp0 - s*logp1  with s = blur / k^2 ----
    elem = blur * ((logp0 - logp1) * inv_k2) - logp0                # (BB, H, W)

    if need_mask:  # static: only emitted when the last batch block is ragged
        bidx = lax.broadcasted_iota(jnp.int32, (BB, W), 0)
        valid = (pl.program_id(0) * BB + bidx) < N                  # (BB, W)
        elem = jnp.where(valid[:, None, :], elem, 0.0)

    # Partial sum over batch + sublane axes; the tiny lane vector is reduced in the
    # wrapper.  Each grid step owns its own output row -> "parallel" grid axis.
    out_ref[...] = jnp.sum(elem, axis=(0, 1), keepdims=True)        # (1, 1, W)


def _round_up(x, m):
    return -(-x // m) * m


def _vmem_capacity_bytes():
    try:
        cap = getattr(pltpu.get_tpu_info(), "vmem_capacity_bytes", None)
        if cap:
            return int(cap)
    except Exception:
        pass
    return 64 << 20  # conservative fallback (v7x per-TensorCore VMEM)


def blur_label_smoothing_loss(pred, target, kernel_size, *,
                              block_batch=None, pred_in_bf16=False):
    """pred: (N, 2, H, W) logits; target: (N, H, W) 0/1 labels.  Scalar mean loss."""
    N, C, H, W = pred.shape
    if C != 2:
        raise ValueError("expected pred with 2 channels")
    if kernel_size % 2 != 1:
        raise ValueError("odd kernel_size required for the shape-preserving blur")
    K = int(kernel_size)
    P = K // 2                                   # == int(K / 2 - 0.5) for odd K
    Hp = H + 2 * P
    Wpad = _round_up(max(W + P, 1), 128)         # lane-dense width, holds the +P halo

    if pred_in_bf16 and pred.dtype != jnp.bfloat16:
        # Optional: halves the dominant HBM stream; in-kernel math stays f32.
        pred = pred.astype(jnp.bfloat16)

    # Target is padded once here: rows get the (P, P) blur halo, lanes get zeros up to
    # a multiple of 128.  0/1 labels are exact in bf16 -> half the target traffic.
    # TODO(synk): ship int8 targets on v5e to shave the residual target traffic.
    tpad = jnp.pad(target.astype(jnp.bfloat16), ((0, 0), (P, P), (0, Wpad - W)))

    # ---- batch-block size: fill VMEM, amortize the ~0.35 us per-grid-step cost ----
    # Per item: two double-buffered input blocks + the in-kernel f32 working set.
    pred_item = 2 * H * W * pred.dtype.itemsize
    tpad_item = Hp * Wpad * 2
    interm_item = (6 * H * W + 4 * H * Wpad) * 4
    vmem_cap = _vmem_capacity_bytes()
    vmem_limit = max(32 << 20, min(vmem_cap * 3 // 4, 100 << 20))  # ~96 MiB v5e/v6e, 48 MiB v7x
    budget = vmem_limit - (4 << 20)
    bb_max = max(1, min(N, budget // (2 * (pred_item + tpad_item) + interm_item)))
    # TODO(synk): a single item larger than the budget would need spatial (H) tiling
    # with a +/-P halo; not implemented here.

    if block_batch is None:
        # Prefer a divisor of N (no ragged block, no mask, no pred padding); fall back
        # to a ragged, masked last block when the divisor costs >~25% extra steps.
        div = 1
        for cand in range(bb_max, 0, -1):
            if N % cand == 0:
                div = cand
                break
        steps_div = N // div
        steps_rag = -(-N // bb_max)
        BB = div if steps_div <= max(steps_rag + 1, steps_rag * 5 // 4) else bb_max
    else:
        BB = max(1, min(int(block_batch), N))
    num_blocks = -(-N // BB)
    need_mask = num_blocks * BB != N             # ragged last block -> mask in kernel

    total = N * 2 * H * W
    kernel = functools.partial(
        _loss_kernel, H=H, W=W, K=K, BB=BB, N=N,
        need_mask=need_mask, inv_k2=1.0 / (K * K))

    cost = pl.CostEstimate(
        flops=int(N * H * W * (12 + 2 * K) + N * H * Wpad * K + 2 * N * H * W * Wpad),
        transcendentals=int(2 * N * H * (W + 1)),
        bytes_accessed=int(pred.size * pred.dtype.itemsize + tpad.size * 2
                           + num_blocks * W * 4))

    out = pl.pallas_call(
        kernel,
        out_shape=jax.ShapeDtypeStruct((num_blocks, 1, W), jnp.float32),
        grid_spec=pltpu.PrefetchScalarGridSpec(
            num_scalar_prefetch=0,
            grid=(num_blocks,),
            in_specs=[
                pl.BlockSpec((BB, 2, H, W), lambda b: (b, 0, 0, 0)),
                pl.BlockSpec((BB, Hp, Wpad), lambda b: (b, 0, 0)),
            ],
            out_specs=pl.BlockSpec((1, 1, W), lambda b: (b, 0, 0)),
        ),
        compiler_params=pltpu.CompilerParams(
            dimension_semantics=("parallel",),   # per-block partials, megacore-friendly
            vmem_limit_bytes=int(vmem_limit),
        ),
        cost_estimate=cost,
    )(pred, tpad)

    return jnp.sum(out) / total


def _reference_loss(pred, target, kernel_size):
    """Pure-JAX reference mirroring the PyTorch forward."""
    logp = jax.nn.log_softmax(pred.astype(jnp.float32), axis=-1)
    pad = int(kernel_size / 2 - 0.5)
    t = target[:, None, :, :].astype(jnp.float32)
    w = jnp.ones((1, 1, kernel_size, kernel_size), jnp.float32)  # Conv2d weight=1, bias=0
    blurred = lax.conv_general_dilated(
        t, w, window_strides=(1, 1), padding=[(pad, pad), (pad, pad)]
    ) / (kernel_size ** 2)
    true_dist = jnp.concatenate([1.0 - blurred, blurred], axis=1)
    return jnp.mean(-true_dist * logp)


if __name__ == "__main__":
    N, H, W = 6, 16, 16
    kernel_size = 3

    key = jax.random.PRNGKey(0)
    kp, kt = jax.random.split(key)
    pred = jax.random.normal(kp, (N, 2, H, W), dtype=jnp.float32)
    target = (jax.random.uniform(kt, (N, H, W)) > 0.5).astype(jnp.float32)

    ref = jax.block_until_ready(_reference_loss(pred, target, kernel_size))

    # Auto path: block size is a divisor of N -> single block, no mask, no padding.
    loss = jax.block_until_ready(blur_label_smoothing_loss(pred, target, kernel_size))
    assert jnp.allclose(loss, ref, atol=1e-5, rtol=1e-4), (loss, ref)

    # Explicit non-divisor block (4 for N=6): ragged last block + in-kernel batch mask
    # (no pred padding).  Exercises the multi-block accumulation path.
    loss2 = jax.block_until_ready(
        blur_label_smoothing_loss(pred, target, kernel_size, block_batch=4))
    assert jnp.allclose(loss2, ref, atol=1e-5, rtol=1e-4), (loss2, ref)

    # Optional bf16-pred path (halves the dominant HBM stream); looser tolerance.
    loss3 = jax.block_until_ready(
        blur_label_smoothing_loss(pred, target, kernel_size, pred_in_bf16=True))
    assert jnp.allclose(loss3, ref, atol=3e-2, rtol=3e-2), (loss3, ref)

    print("KERNEL_OK")
</pallas_src>

<mosaic_0001>
module attributes {stable_mosaic.version = 11 : i64} {
  func.func @_loss_kernel(%arg0: i32, %arg1: memref<6x2x16x16xf32, #tpu.memory_space<vmem>>, %arg2: memref<6x18x128xbf16, #tpu.memory_space<vmem>>, %arg3: memref<1x1x16xf32, #tpu.memory_space<vmem>>) attributes {dimension_semantics = [#tpu.dimension_semantics<parallel>], iteration_bounds = array<i64: 1>, scalar_prefetch = 0 : i64, scratch_operands = 0 : i64, tpu.core_type = #tpu.core_type<tc>, window_params = [{transform_indices = @transform_0, window_bounds = array<i64: 6, 2, 16, 16>}, {transform_indices = @transform_1, window_bounds = array<i64: 6, 18, 128>}, {transform_indices = @transform_2, window_bounds = array<i64: 1, 1, 16>}]} {
    %c0 = arith.constant 0 : index
    %c0_0 = arith.constant 0 : index
    %c0_1 = arith.constant 0 : index
    %c0_2 = arith.constant 0 : index
    %0 = vector.load %arg1[%c0, %c0_0, %c0_1, %c0_2] : memref<6x2x16x16xf32, #tpu.memory_space<vmem>>, vector<6x1x16x16xf32>
    %1 = vector.shape_cast %0 : vector<6x1x16x16xf32> to vector<6x16x16xf32>
    %cst = arith.constant dense<0xFF800000> : vector<6x16xf32>
    %2 = vector.multi_reduction <maximumf>, %1, %cst [2] : vector<6x16x16xf32> to vector<6x16xf32>
    %3 = vector.shape_cast %2 : vector<6x16xf32> to vector<6x16x1xf32>
    %4 = vector.broadcast %3 : vector<6x16x1xf32> to vector<6x16x16xf32>
    %5 = arith.subf %1, %4 : vector<6x16x16xf32>
    %6 = math.exp %5 : vector<6x16x16xf32>
    %cst_3 = arith.constant dense<0.000000e+00> : vector<6x16xf32>
    %7 = vector.multi_reduction <add>, %6, %cst_3 [2] : vector<6x16x16xf32> to vector<6x16xf32>
    %8 = vector.shape_cast %7 : vector<6x16xf32> to vector<6x16x1xf32>
    %9 = math.log %8 : vector<6x16x1xf32>
    %10 = arith.addf %3, %9 : vector<6x16x1xf32>
    %11 = vector.broadcast %10 : vector<6x16x1xf32> to vector<6x16x16xf32>
    %12 = arith.subf %1, %11 : vector<6x16x16xf32>
    %c0_4 = arith.constant 0 : index
    %c1 = arith.constant 1 : index
    %c0_5 = arith.constant 0 : index
    %c0_6 = arith.constant 0 : index
    %13 = vector.load %arg1[%c0_4, %c1, %c0_5, %c0_6] : memref<6x2x16x16xf32, #tpu.memory_space<vmem>>, vector<6x1x16x16xf32>
    %14 = vector.shape_cast %13 : vector<6x1x16x16xf32> to vector<6x16x16xf32>
    %cst_7 = arith.constant dense<0xFF800000> : vector<6x16xf32>
    %15 = vector.multi_reduction <maximumf>, %14, %cst_7 [2] : vector<6x16x16xf32> to vector<6x16xf32>
    %16 = vector.shape_cast %15 : vector<6x16xf32> to vector<6x16x1xf32>
    %17 = vector.broadcast %16 : vector<6x16x1xf32> to vector<6x16x16xf32>
    %18 = arith.subf %14, %17 : vector<6x16x16xf32>
    %19 = math.exp %18 : vector<6x16x16xf32>
    %cst_8 = arith.constant dense<0.000000e+00> : vector<6x16xf32>
    %20 = vector.multi_reduction <add>, %19, %cst_8 [2] : vector<6x16x16xf32> to vector<6x16xf32>
    %21 = vector.shape_cast %20 : vector<6x16xf32> to vector<6x16x1xf32>
    %22 = math.log %21 : vector<6x16x1xf32>
    %23 = arith.addf %16, %22 : vector<6x16x1xf32>
    %24 = vector.broadcast %23 : vector<6x16x1xf32> to vector<6x16x16xf32>
    %25 = arith.subf %14, %24 : vector<6x16x16xf32>
    %c0_9 = arith.constant 0 : index
    %c0_10 = arith.constant 0 : index
    %c0_11 = arith.constant 0 : index
    %26 = vector.load %arg2[%c0_9, %c0_10, %c0_11] : memref<6x18x128xbf16, #tpu.memory_space<vmem>>, vector<6x16x128xbf16>
    %27 = arith.extf %26 : vector<6x16x128xbf16> to vector<6x16x128xf32>
    %c0_12 = arith.constant 0 : index
    %c1_13 = arith.constant 1 : index
    %c0_14 = arith.constant 0 : index
    %28 = vector.load %arg2[%c0_12, %c1_13, %c0_14] : memref<6x18x128xbf16, #tpu.memory_space<vmem>>, vector<6x16x128xbf16>
    %29 = arith.extf %28 : vector<6x16x128xbf16> to vector<6x16x128xf32>
    %30 = arith.addf %27, %29 : vector<6x16x128xf32>
    %c0_15 = arith.constant 0 : index
    %c2 = arith.constant 2 : index
    %c0_16 = arith.constant 0 : index
    %31 = vector.load %arg2[%c0_15, %c2, %c0_16] : memref<6x18x128xbf16, #tpu.memory_space<vmem>>, vector<6x16x128xbf16>
    %32 = arith.extf %31 : vector<6x16x128xbf16> to vector<6x16x128xf32>
    %33 = arith.addf %30, %32 : vector<6x16x128xf32>
    %34 = tpu.iota {dimensions = array<i32: 0>} : vector<128x16xi32>
    %35 = tpu.iota {dimensions = array<i32: 1>} : vector<128x16xi32>
    %36 = arith.subi %34, %35 : vector<128x16xi32>
    %37 = math.absi %36 : vector<128x16xi32>
    %c1_i32 = arith.constant 1 : i32
    %38 = vector.broadcast %c1_i32 : i32 to vector<128x16xi32>
    %39 = arith.cmpi sle, %37, %38 : vector<128x16xi32>
    %c16_i32 = arith.constant 16 : i32
    %40 = vector.broadcast %c16_i32 : i32 to vector<128x16xi32>
    %41 = arith.cmpi slt, %34, %40 : vector<128x16xi32>
    %42 = arith.andi %39, %41 : vector<128x16xi1>
    %43 = arith.extui %42 : vector<128x16xi1> to vector<128x16xi32>
    %44 = arith.sitofp %43 : vector<128x16xi32> to vector<128x16xf32>
    %45 = vector.shape_cast %33 : vector<6x16x128xf32> to vector<96x128xf32>
    %cst_17 = arith.constant dense<0.000000e+00> : vector<96x16xf32>
    %46 = tpu.matmul %45, %44, %cst_17 {dimension_numbers = #tpu.dot_dimension_numbers<[1], [0], [0], [1], [0, 0, 1, 1], [], []>} : vector<96x128xf32>, vector<128x16xf32>, vector<96x16xf32> -> vector<96x16xf32>
    %47 = vector.shape_cast %46 : vector<96x16xf32> to vector<6x16x16xf32>
    %48 = arith.subf %12, %25 : vector<6x16x16xf32>
    %cst_18 = arith.constant 0.111111112 : f32
    %49 = vector.broadcast %cst_18 : f32 to vector<6x16x16xf32>
    %50 = arith.mulf %48, %49 : vector<6x16x16xf32>
    %51 = arith.mulf %47, %50 : vector<6x16x16xf32>
    %52 = arith.subf %51, %12 : vector<6x16x16xf32>
    %cst_19 = arith.constant dense<0.000000e+00> : vector<16xf32>
    %53 = vector.multi_reduction <add>, %52, %cst_19 [0, 1] : vector<6x16x16xf32> to vector<16xf32>
    %54 = vector.shape_cast %53 : vector<16xf32> to vector<1x1x16xf32>
    %c0_20 = arith.constant 0 : index
    %c0_21 = arith.constant 0 : index
    %c0_22 = arith.constant 0 : index
    %55 = vector.load %arg3[%c0_20, %c0_21, %c0_22] : memref<1x1x16xf32, #tpu.memory_space<vmem>>, vector<1x1x16xf32>
    tpu.vector_store %arg3[%c0_20, %c0_21, %c0_22], %54 {strides = array<i32>} : memref<1x1x16xf32, #tpu.memory_space<vmem>>, vector<1x1x16xf32>,
    return
  }
  func.func @transform_0(%arg0: i32) -> (i32, i32, i32, i32) {
    %c0_i32 = arith.constant 0 : i32
    %c0_i32_0 = arith.constant 0 : i32
    %c0_i32_1 = arith.constant 0 : i32
    %c0_i32_2 = arith.constant 0 : i32
    return %arg0, %c0_i32, %c0_i32_0, %c0_i32_1 : i32, i32, i32, i32
  }
  func.func @transform_1(%arg0: i32) -> (i32, i32, i32) {
    %c0_i32 = arith.constant 0 : i32
    %c0_i32_0 = arith.constant 0 : i32
    %c0_i32_1 = arith.constant 0 : i32
    return %arg0, %c0_i32, %c0_i32_0 : i32, i32, i32
  }
  func.func @transform_2(%arg0: i32) -> (i32, i32, i32) {
    %c0_i32 = arith.constant 0 : i32
    %c0_i32_0 = arith.constant 0 : i32
    %c0_i32_1 = arith.constant 0 : i32
    return %arg0, %c0_i32, %c0_i32_0 : i32, i32, i32
  }
}

</mosaic_0001>

<bundles_post_ra>
// kernel: tpu_custom_call.1
= control target key start
LH: loop header
LB: loop body
LE: loop exit
PB: predicated region body
PF: predicated region fallthrough
CT: control target
= control target key end

     0   :  { %7 = vsyncpa [#allocation3], 0  ;;  %s1590_s0 = inlined_call_operand.hbm [shape: f32[6,2,16,16], index: 0, kind: input, shape index: {}]   ;;  %s1591_s1 = inlined_call_operand.hbm [shape: bf16[6,18,128], index: 1, kind: input, shape index: {}]   ;;  %s1592_s2 = inlined_call_operand.hbm [shape: f32[1,1,16], index: 2, kind: output, shape index: {}]  }
   0x1   :  { %8 = vsyncpa [#allocation6], 0 }
   0x2   :  { %9 = vsyncpa [#allocation4], 0  ;;  %s1189_s9 = smov [#allocation2]  }
   0x3   :  { %s15_s10 = sshll.u32 %s1189_s9, 4  ;;  %s16_s10 = int_to_ptr.vmem [resolvable:$true] %s15_s10 }
   0x4   :  { %s1131_s11 = scalar_lea.vmem %s16_s10, 3072  ;;  %p1136_p1 = scmp.lt.s32.totalorder %s16_s10, %s16_s10 }
   0x5   :  { %p1132_p0 = scmp.ne.s32.totalorder %s16_s10, %s1131_s11  ;;  %p1137_p2 = scmp.lt.s32.totalorder %s1131_s11, %s1131_s11 }
   0x7   :  { %p1138_p3 = por %p1137_p2, %p1136_p1 }
   0x9   :  { %p1139_p4 = pnand %p1138_p3, %p1132_p0 }
   0xb   :  { %1142 = shalt.err (!%p1139_p4)
}
   0xc   :  { %s1190_s12 = smov 128   ;;  %s1191_s13 = smov 8  }
   0xd   :  { %21 = dma.hbm_to_vmem [thread:$0]  %s1590_s0, 3072, %s16_s10, [#allocation3], %s1190_s12, %s1190_s12, %s1191_s13  }
   0xe   :  { %s1192_s16 = smov [#allocation5]  }
   0xf   :  { %s27_s17 = sshll.u32 %s1192_s16, 4  ;;  %s28_s17 = int_to_ptr.vmem [resolvable:$true] %s27_s17 }
  0x10   :  { %s1151_s18 = scalar_lea.vmem %s28_s17, 1152  ;;  %p1156_p6 = scmp.lt.s32.totalorder %s28_s17, %s28_s17 }
  0x11   :  { %p1152_p5 = scmp.ne.s32.totalorder %s28_s17, %s1151_s18  ;;  %p1157_p7 = scmp.lt.s32.totalorder %s1151_s18, %s1151_s18 }
  0x13   :  { %p1158_p8 = por %p1157_p7, %p1156_p6 }
  0x15   :  { %p1159_p9 = pnand %p1158_p8, %p1152_p5 }
  0x17   :  { %1162 = shalt.err (!%p1159_p9)
}
  0x18   :  { %s1193_s19 = smov 64   ;;  %s1194_s20 = smov 4  }
  0x19   :  { %33 = dma.hbm_to_vmem [thread:$0]  %s1591_s1, 1152, %s28_s17, [#allocation6], %s1193_s19, %s1193_s19, %s1194_s20  }
  0x1a   :  { %1183 = dma.done.wait [#allocation3], 3072  }
  0x1b   :  { %1184 = vsyncadd [#allocation3], 4294964224 }
  0x1c   :  { %1185 = dma.done.wait [#allocation6], 1152  }
  0x1d   :  { %1186 = vsyncadd [#allocation6], 4294966144  ;;  %v560_v0 = vlaneseq  ;;  %vm52_vm0 = vcmask 130048   ;;  %v1218_v4 = vld [vmem:[#allocation2] sm:$0xff]  ;;  %v1220_v5 = vld [vmem:[#allocation2 + $0x10] sm:$0xff]  ;;  %vm432_vm1 = vcmask 1046528  }
  0x1e   :  { %v1222_v6 = vld [vmem:[#allocation2 + $0x8] sm:$0xff]  ;;  %v53_v8 = vsel %vm52_vm0, %v1218_v4, -inf  ;;  %v222_v9 = vsel %vm52_vm0, %v1220_v5, -inf  ;;  %v1228_v10 = vld [vmem:[#allocation2 + $0x18] sm:$0xff]  ;;  %v1230_v12 = vld [vmem:[#allocation2 + $0x20] sm:$0xff]  ;;  %vm505_vm2 = vcmask 1045504  }
  0x1f   :  { %v561_v1 = vshrl.u32 %v560_v0, 7  ;;  %v578_v2 = vand.u32 127, %v560_v0  ;;  %54 = vmax.xlane.f32.xlu0 %v53_v8  ;;  %223 = vmax.xlane.f32.xlu1 %v222_v9  ;;  %v1232_v13 = vld [vmem:[#allocation2 + $0x30] sm:$0xff]  ;;  %v1234_v14 = vld [vmem:[#allocation2 + $0x28] sm:$0xff]  ;;  %v56_v15 = vsel %vm52_vm0, %v1222_v6, -inf  ;;  %v225_v16 = vsel %vm52_vm0, %v1228_v10, -inf }
  0x20   :  { %v1240_v17 = vld [vmem:[#allocation2 + $0x38] sm:$0xff]  ;;  %v1242_v18 = vld [vmem:[#allocation2 + $0x40] sm:$0xff]  ;;  %v1244_v19 = vld [vmem:[#allocation2 + $0x50] sm:$0xff]  ;;  %v59_v24 = vsel %vm52_vm0, %v1230_v12, -inf  ;;  %v228_v29 = vsel %vm52_vm0, %v1232_v13, -inf  ;;  %v62_v30 = vsel %vm52_vm0, %v1234_v14, -inf }
  0x21   :  { %v579_v3 = vsub.s32 %v561_v1, %v578_v2  ;;  %v562_v7 = vadd.s32 8, %v561_v1  ;;  %v1246_v20 = vld [vmem:[#allocation2 + $0x48] sm:$0xff]  ;;  %v1248_v21 = vld [vmem:[#allocation2 + $0x58] sm:$0xff]  ;;  %v1250_v22 = vld [vmem:[#allocation2 + $0x60] sm:$0xff]  ;;  %v231_v31 = vsel %vm52_vm0, %v1240_v17, -inf  ;;  %v1270_v32 = vsel %vm52_vm0, %v1242_v18, -inf }
  0x22   :  { %v1254_v25 = vld [vmem:[#allocation2 + $0x70] sm:$0xff]  ;;  %v1256_v26 = vld [vmem:[#allocation2 + $0x68] sm:$0xff]  ;;  %v1258_v27 = vld [vmem:[#allocation2 + $0x78] sm:$0xff]  ;;  %v1274_v33 = vsel %vm52_vm0, %v1244_v19, -inf  ;;  %v1278_v34 = vsel %vm52_vm0, %v1246_v20, -inf  ;;  %v1282_v35 = vsel %vm52_vm0, %v1248_v21, -inf }
  0x23   :  { %v596_v11 = vsub.s32 0, %v579_v3  ;;  %v580_v23 = vsub.s32 %v562_v7, %v578_v2  ;;  %57 = vmax.xlane.f32.xlu0 %v56_v15  ;;  %226 = vmax.xlane.f32.xlu1 %v225_v16  ;;  %v1286_v36 = vsel %vm52_vm0, %v1250_v22, -inf  ;;  %v1290_v37 = vsel %vm52_vm0, %v1254_v25, -inf  ;;  %v964_v41 = vld [vmem:[#allocation5] sm:$0xff]   ;;  %v380_v42 = vld [vmem:[#allocation5 + $0xc] sm:$0xff]   ;;  %v975_v9 = vld [vmem:[#allocation5 + $0x18] sm:$0xff]  }
  0x24   :  { %v1294_v38 = vsel %vm52_vm0, %v1256_v26, -inf  ;;  %v1298_v39 = vsel %vm52_vm0, %v1258_v27, -inf  ;;  %v965_v43 = vunpack.c.l.bf16 %v964_v41  ;;  %v966_v44 = vunpack.c.h.bf16 %v964_v41  ;;  %v487_v45 = vld [vmem:[#allocation5] sm:$0xe]  ;;  %v402_v46 = vld [vmem:[#allocation5 + $0x8] sm:$0x1] }
  0x25   :  { %v1260_v28 = vmin.u32 %v596_v11, %v579_v3  ;;  %v599_v40 = vsub.s32 0, %v580_v23  ;;  %v392_v47 = vunpack.c.l.bf16 %v380_v42  ;;  %v493_v49 = vunpack.c.l.bf16 %v487_v45  ;;  %v488_v52 = vld [vmem:[#allocation5 + $0xc] sm:$0xe]  ;;  %v403_v57 = vld [vmem:[#allocation5 + $0x14] sm:$0x1]  ;;  %s1196_s0 = smov [#allocation7]  }
  0x26   :  { %v408_v50 = vunpack.c.l.bf16 %v402_v46  ;;  %v393_v51 = vunpack.c.h.bf16 %v380_v42  ;;  %v433_v53 = vrot.slane %v965_v43, 1  ;;  %v434_v54 = vrot.slane %v966_v44, 1  ;;  %v404_v45 = vld [vmem:[#allocation5 + $0x20] sm:$0x1]  ;;  %v384_v46 = vld [vmem:[#allocation5 + $0x24] sm:$0xff]   ;;  %s933_s1 = sshll.u32 %s1196_s0, 4  ;;  %s934_s1 = int_to_ptr.vmem [resolvable:$true] %s933_s1 }
  0x27   :  { %vm643_vm3 = vcmp.le.s32.totalorder %v1260_v28, 1  ;;  %60 = vmax.xlane.f32.xlu0 %v59_v24  ;;  %229 = vmax.xlane.f32.xlu1 %v228_v29  ;;  %v944_v48 = vmin.u32 %v599_v40, %v580_v23  ;;  %v507_v55 = vrot.slane %v966_v44, 2  ;;  %v438_v56 = vrot.slane %v392_v47, 1  ;;  %v489_v24 = vld [vmem:[#allocation5 + $0x18] sm:$0xe]  ;;  %s1163_s23 = scalar_lea.vmem %s934_s1, 16  ;;  %p1168_p11 = scmp.lt.s32.totalorder %s934_s1, %s934_s1 }
  0x28   :  { %v506_v58 = vrot.slane %v493_v49, 2  ;;  %v436_v59 = vrot.slane %v408_v50, 1  ;;  %v509_v60 = vrot.slane %v408_v50, 2  ;;  %v1195_v61 = vmov 1.0   ;;  %p1164_p10 = scmp.ne.s32.totalorder %s934_s1, %s1163_s23  ;;  %s1167_s24 = scalar_lea.vmem %s934_s1, 32 }
  0x29   :  { %vm644_vm4 = vcmp.le.s32.totalorder %v944_v48, 1  ;;  %v435_v62 = vsel %vm432_vm1, %v433_v53, %v434_v54  ;;  %v439_v63 = vrot.slane %v393_v51, 1  ;;  %v494_v0 = vunpack.c.l.bf16 %v488_v52  ;;  %v490_v52 = vld [vmem:[#allocation5 + $0x24] sm:$0xe]  ;;  %v405_v53 = vld [vmem:[#allocation5 + $0x2c] sm:$0x1]  ;;  %p1169_p12 = scmp.lt.s32.totalorder %s1167_s24, %s1163_s23 }
  0x2a   :  { %991 = vmatprep.subr.msk.mxu0 %vm644_vm4, %v1195_v61  ;;  %v512_v1 = vrot.slane %v393_v51, 2  ;;  %1013 = vmatprep.subr.msk.mxu1 %vm644_vm4, %v1195_v61  ;;  %v475_v2 = vadd.f32 %v965_v43, %v435_v62  ;;  %v508_v3 = vsel %vm505_vm2, %v506_v58, %v507_v55  ;;  %v437_v7 = vsel %vm432_vm1, %v434_v54, %v436_v59 }
  0x2b   :  { %63 = vmax.xlane.f32.xlu0 %v62_v30  ;;  %232 = vmax.xlane.f32.xlu1 %v231_v31  ;;  %v409_v8 = vunpack.c.l.bf16 %v403_v57  ;;  %v476_v11 = vadd.f32 %v966_v44, %v437_v7  ;;  %v510_v15 = vsel %vm505_vm2, %v507_v55, %v509_v60  ;;  %v440_v16 = vsel %vm432_vm1, %v438_v56, %v439_v63  ;;  %p1170_p13 = por %p1169_p12, %p1168_p11 }
  0x2c   :  { %992 = vmatpush3.msk.msra.mxu0 %vm644_vm4, %v1195_v61  ;;  %v511_v23 = vrot.slane %v494_v0, 2  ;;  %1015 = vmatpush3.msk.msra.mxu1 %vm644_vm4, %v1195_v61  ;;  %v548_v29 = vadd.f32 %v508_v3, %v475_v2  ;;  %v477_v30 = vadd.f32 %v440_v16, %v392_v47  ;;  %v969_v43 = vunpack.c.l.bf16 %v975_v9 }
  0x2d   :  { %993 = vmatprep.subr.msk.mxu0 %vm643_vm3, %v1195_v61  ;;  %v441_v31 = vrot.slane %v409_v8, 1  ;;  %v514_v40 = vrot.slane %v409_v8, 2  ;;  %1014 = vmatprep.subr.msk.mxu1 %vm643_vm3, %v1195_v61  ;;  %v549_v41 = vadd.f32 %v510_v15, %v476_v11  ;;  %v970_v44 = vunpack.c.h.bf16 %v975_v9  ;;  %v976_v9 = vld [vmem:[#allocation5 + $0x30] sm:$0xff]   ;;  %p1171_p0 = pnand %p1170_p13, %p1164_p10 }
  0x2e   :  { %994 = vmatpush3.msk.msra.mxu0 %vm643_vm3, %v1195_v61  ;;  %v513_v42 = vsel %vm505_vm2, %v511_v23, %v512_v1  ;;  %1016 = vmatpush3.msk.msra.mxu1 %vm643_vm3, %v1195_v61  ;;  %v495_v50 = vunpack.c.l.bf16 %v489_v24  ;;  %v443_v55 = vrot.slane %v969_v43, 1  ;;  %v410_v58 = vunpack.c.l.bf16 %v404_v45  ;;  %v1334_v45 = vld [vmem:[#allocation2 + $0x80] sm:$0xff] }
  0x2f   :  { %66 = vmax.xlane.f32.xlu0 %v1270_v32  ;;  %235 = vmax.xlane.f32.xlu1 %v1274_v33  ;;  %v550_v47 = vadd.f32 %v513_v42, %v477_v30  ;;  %v442_v48 = vsel %vm432_vm1, %v439_v63, %v441_v31  ;;  %v515_v49 = vsel %vm505_vm2, %v512_v1, %v514_v40  ;;  %v444_v56 = vrot.slane %v970_v44, 1  ;;  %v491_v30 = vld [vmem:[#allocation5 + $0x30] sm:$0xe] }
  0x30   :  { %995 = vmatprep.mubr.f32.mxu0 %v548_v29  ;;  %v478_v54 = vadd.f32 %v442_v48, %v393_v51  ;;  %v517_v57 = vrot.slane %v970_v44, 2  ;;  %v516_v28 = vrot.slane %v495_v50, 2  ;;  %v396_v59 = vunpack.c.l.bf16 %v384_v46 }
  0x31   :  { %996 = vmatmul.mubr.f32.vlgmr.msra.gmra.mxu0 %v549_v41  ;;  %v397_v32 = vunpack.c.h.bf16 %v384_v46  ;;  %v445_v60 = vsel %vm432_vm1, %v443_v55, %v444_v56  ;;  %v496_v61 = vunpack.c.l.bf16 %v490_v52  ;;  %v411_v62 = vunpack.c.l.bf16 %v405_v53  ;;  %v1336_v46 = vld [vmem:[#allocation2 + $0x90] sm:$0xff] }
  0x32   :  { %998 = vmatprep.mubr.f32.mxu0 %v550_v47  ;;  %v551_v33 = vadd.f32 %v515_v49, %v478_v54  ;;  %v479_v63 = vadd.f32 %v969_v43, %v445_v60  ;;  %v518_v51 = vsel %vm505_vm2, %v516_v28, %v517_v57  ;;  %v446_v0 = vrot.slane %v410_v58, 1  ;;  %v406_v43 = vld [vmem:[#allocation5 + $0x38] sm:$0x1]  ;;  %v388_v60 = vld [vmem:[#allocation5 + $0x3c] sm:$0xff]  }
  0x33   :  { %69 = vmax.xlane.f32.xlu0 %v1278_v34  ;;  %238 = vmax.xlane.f32.xlu1 %v1282_v35  ;;  %v519_v1 = vrot.slane %v410_v58, 2  ;;  %v448_v2 = vrot.slane %v396_v59, 1  ;;  %v449_v3 = vrot.slane %v397_v32, 1  ;;  %v521_v7 = vrot.slane %v496_v61, 2  ;;  %v1347_v61 = vld [vmem:[#allocation2 + $0x88] sm:$0xff] }
  0x34   :  { %v522_v8 = vrot.slane %v397_v32, 2  ;;  %v552_v11 = vadd.f32 %v518_v51, %v479_v63  ;;  %v447_v15 = vsel %vm432_vm1, %v444_v56, %v446_v0  ;;  %v451_v23 = vrot.slane %v411_v62, 1  ;;  %v407_v63 = vld [vmem:[#allocation5 + $0x44] sm:$0x1] }
  0x35   :  { %999 = vmatmul.mubr.f32.gmra.mxu0 %v551_v33  ;;  %v520_v16 = vsel %vm505_vm2, %v517_v57, %v519_v1  ;;  %v480_v34 = vadd.f32 %v970_v44, %v447_v15  ;;  %v450_v35 = vsel %vm432_vm1, %v448_v2, %v449_v3  ;;  %v524_v29 = vrot.slane %v411_v62, 2  ;;  %v492_v2 = vld [vmem:[#allocation5 + $0x3c] sm:$0xe] }
  0x36   :  { %v523_v24 = vsel %vm505_vm2, %v521_v7, %v522_v8  ;;  %v481_v31 = vadd.f32 %v450_v35, %v396_v59  ;;  %v452_v40 = vsel %vm432_vm1, %v449_v3, %v451_v23  ;;  %v973_v41 = vunpack.c.l.bf16 %v976_v9  ;;  %1001 = vmatprep.mubr.f32.mxu0 %v552_v11  ;;  %v1359_v35 = vld [vmem:[#allocation2 + $0xb0] sm:$0xff] }
  0x37   :  { %72 = vmax.xlane.f32.xlu0 %v1286_v36  ;;  %241 = vmax.xlane.f32.xlu1 %v1290_v37  ;;  %v974_v42 = vunpack.c.h.bf16 %v976_v9  ;;  %v553_v44 = vadd.f32 %v520_v16, %v480_v34  ;;  %v482_v47 = vadd.f32 %v452_v40, %v397_v32  ;;  %v525_v48 = vsel %vm505_vm2, %v522_v8, %v524_v29  ;;  %v1357_v34 = vld [vmem:[#allocation2 + $0xa0] sm:$0xff] }
  0x38   :  { %v497_v49 = vunpack.c.l.bf16 %v491_v30  ;;  %v554_v50 = vadd.f32 %v523_v24, %v481_v31  ;;  %v453_v36 = vrot.slane %v973_v41, 1  ;;  %v412_v55 = vunpack.c.l.bf16 %v406_v43 }
  0x39   :  { %v454_v52 = vrot.slane %v974_v42, 1  ;;  %v527_v37 = vrot.slane %v974_v42, 2  ;;  %1002 = vmatmul.mubr.f32.gmra.mxu0 %v553_v44  ;;  %v555_v53 = vadd.f32 %v525_v48, %v482_v47  ;;  %v77_v56 = vsel %vm52_vm0, %v1334_v45, -inf }
  0x3a   :  { %v526_v54 = vrot.slane %v497_v49, 2  ;;  %v246_v57 = vsel %vm52_vm0, %v1336_v46, -inf  ;;  %1004 = vmatprep.mubr.f32.mxu1 %v554_v50  ;;  %v456_v32 = vrot.slane %v412_v55, 1  ;;  %v529_v33 = vrot.slane %v412_v55, 2 }
  0x3b   :  { %75 = vmax.xlane.f32.xlu0 %v1294_v38  ;;  %244 = vmax.xlane.f32.xlu1 %v1298_v39  ;;  %v455_v28 = vsel %vm432_vm1, %v453_v36, %v454_v52  ;;  %v1349_v38 = vld [vmem:[#allocation2 + $0x98] sm:$0xff]  ;;  %v400_v39 = vunpack.c.l.bf16 %v388_v60  ;;  %v401_v62 = vunpack.c.h.bf16 %v388_v60  ;;  %v413_v3 = vunpack.c.l.bf16 %v407_v63  ;;  %v1369_v36 = vld [vmem:[#allocation2 + $0xa8] sm:$0xff] }
  0x3c   :  { %v483_v58 = vadd.f32 %v973_v41, %v455_v28  ;;  %v528_v59 = vsel %vm505_vm2, %v526_v54, %v527_v37  ;;  %1005 = vmatmul.mubr.f32.vlgmr.msra.gmra.mxu1 %v555_v53  ;;  %v457_v0 = vsel %vm432_vm1, %v454_v52, %v456_v32  ;;  %v530_v1 = vsel %vm505_vm2, %v527_v37, %v529_v33  ;;  %v1371_v52 = vld [vmem:[#allocation2 + $0xb8] sm:$0xff] }
  0x3d   :  { %v484_v7 = vadd.f32 %v974_v42, %v457_v0  ;;  %v458_v8 = vrot.slane %v400_v39, 1  ;;  %v459_v9 = vrot.slane %v401_v62, 1  ;;  %v498_v11 = vunpack.c.l.bf16 %v492_v2  ;;  %1596 = vst [vmem:[#allocation11_spill] sm:$0xff] %v1369_v36  ;;  %1597 = vst [vmem:[#allocation12_spill] sm:$0xff] %v1371_v52 }
  0x3e   :  { %v556_v51 = vadd.f32 %v528_v59, %v483_v58  ;;  %v80_v15 = vsel %vm52_vm0, %v1347_v61, -inf  ;;  %v249_v16 = vsel %vm52_vm0, %v1349_v38, -inf  ;;  %v461_v23 = vrot.slane %v413_v3, 1 }
  0x3f   :  { %78 = vmax.xlane.f32.xlu0 %v77_v56  ;;  %247 = vmax.xlane.f32.xlu1 %v246_v57  ;;  %v557_v24 = vadd.f32 %v530_v1, %v484_v7  ;;  %v460_v29 = vsel %vm432_vm1, %v458_v8, %v459_v9  ;;  %v531_v30 = vrot.slane %v498_v11, 2  ;;  %v532_v31 = vrot.slane %v401_v62, 2 }
  0x40   :  { %1007 = vmatprep.mubr.f32.mxu1 %v556_v51  ;;  %v485_v40 = vadd.f32 %v460_v29, %v400_v39  ;;  %v462_v41 = vsel %vm432_vm1, %v459_v9, %v461_v23  ;;  %v534_v42 = vrot.slane %v413_v3, 2  ;;  %v83_v47 = vsel %vm52_vm0, %v1357_v34, -inf }
  0x41   :  { %v533_v43 = vsel %vm505_vm2, %v531_v30, %v532_v31  ;;  %v486_v44 = vadd.f32 %v462_v41, %v401_v62  ;;  %v252_v48 = vsel %vm52_vm0, %v1359_v35, -inf  ;;  %1008 = vmatmul.mubr.f32.gmra.mxu1 %v557_v24  ;;  %v86_v53 = vsel %vm52_vm0, %v1369_v36, -inf }
  0x42   :  { %v558_v49 = vadd.f32 %v533_v43, %v485_v40  ;;  %v535_v50 = vsel %vm505_vm2, %v532_v31, %v534_v42  ;;  %v255_v54 = vsel %vm52_vm0, %v1371_v52, -inf  ;;  %vm925_vm5 = vcmask 122880  }
  0x43   :  { %81 = vmax.xlane.f32.xlu0 %v80_v15  ;;  %250 = vmax.xlane.f32.xlu1 %v249_v16  ;;  %v559_v37 = vadd.f32 %v535_v50, %v486_v44 }
  0x44   :  { %1010 = vmatprep.mubr.f32.mxu1 %v558_v49 }
  0x45   :  { %1011 = vmatmul.mubr.f32.gmra.mxu1 %v559_v37 }
  0x47   :  { %84 = vmax.xlane.f32.xlu0 %v83_v47  ;;  %253 = vmax.xlane.f32.xlu1 %v252_v48 }
  0x4b   :  { %87 = vmax.xlane.f32.xlu0 %v86_v53  ;;  %256 = vmax.xlane.f32.xlu1 %v255_v54 }
  0xa8   :  { %v1377_v55 = vpop.xlane.xlu0 %54  ;;  %v1379_v56 = vpop.xlane.xlu1 %223 }
  0xa9   :  { %v89_v57 = vsub.f32 %v1218_v4, %v1377_v55  ;;  %v258_v28 = vsub.f32 %v1220_v5, %v1379_v56 }
  0xab   :  { %v101_v58 = vmul.f32 1.442695, %v89_v57  ;;  %v270_v59 = vmul.f32 1.442695, %v258_v28 }
  0xac   :  { %v1385_v32 = vpop.xlane.xlu0 %57  ;;  %v1387_v33 = vpop.xlane.xlu1 %226 }
  0xad   :  { %1025 = vpow2.f32 %v101_v58  ;;  %v90_v60 = vsub.f32 %v1222_v6, %v1385_v32  ;;  %v259_v39 = vsub.f32 %v1228_v10, %v1387_v33 }
  0xae   :  { %1027 = vpow2.f32 %v270_v59 }
  0xaf   :  { %v103_v62 = vmul.f32 1.442695, %v90_v60  ;;  %v272_v63 = vmul.f32 1.442695, %v259_v39 }
  0xb0   :  { %v1393_v51 = vpop.xlane.xlu0 %60  ;;  %v1395_v0 = vpop.xlane.xlu1 %229 }
  0xb1   :  { %1029 = vpow2.f32 %v103_v62  ;;  %v91_v1 = vsub.f32 %v1230_v12, %v1393_v51  ;;  %v260_v2 = vsub.f32 %v1232_v13, %v1395_v0 }
  0xb2   :  { %1031 = vpow2.f32 %v272_v63 }
  0xb3   :  { %v105_v3 = vmul.f32 1.442695, %v91_v1  ;;  %v274_v7 = vmul.f32 1.442695, %v260_v2 }
  0xb4   :  { %v1401_v8 = vpop.xlane.xlu0 %63  ;;  %v1403_v9 = vpop.xlane.xlu1 %232 }
  0xb5   :  { %1033 = vpow2.f32 %v105_v3  ;;  %v92_v11 = vsub.f32 %v1234_v14, %v1401_v8  ;;  %v261_v15 = vsub.f32 %v1240_v17, %v1403_v9 }
  0xb6   :  { %1035 = vpow2.f32 %v274_v7 }
  0xb7   :  { %v107_v16 = vmul.f32 1.442695, %v92_v11  ;;  %v276_v23 = vmul.f32 1.442695, %v261_v15 }
  0xb8   :  { %v1409_v24 = vpop.xlane.xlu0 %66  ;;  %v1411_v29 = vpop.xlane.xlu1 %235 }
  0xb9   :  { %1037 = vpow2.f32 %v107_v16  ;;  %v93_v30 = vsub.f32 %v1242_v18, %v1409_v24  ;;  %v262_v31 = vsub.f32 %v1244_v19, %v1411_v29 }
  0xba   :  { %v1026_v40 = vpop.eup %1025  ;;  %1039 = vpow2.f32 %v276_v23 }
  0xbb   :  { %v1028_v41 = vpop.eup %1027  ;;  %v109_v42 = vmul.f32 1.442695, %v93_v30  ;;  %v278_v43 = vmul.f32 1.442695, %v262_v31  ;;  %v125_v44 = vsel %vm52_vm0, %v1026_v40, 0.0 }
  0xbc   :  { %126 = vadd.xlane.f32.xlu0 %v125_v44  ;;  %v1418_v47 = vpop.xlane.xlu0 %69  ;;  %v1420_v48 = vpop.xlane.xlu1 %238  ;;  %v294_v37 = vsel %vm52_vm0, %v1028_v41, 0.0 }
  0xbd   :  { %1041 = vpow2.f32 %v109_v42  ;;  %v94_v49 = vsub.f32 %v1246_v20, %v1418_v47  ;;  %v263_v50 = vsub.f32 %v1248_v21, %v1420_v48 }
  0xbe   :  { %v1030_v53 = vpop.eup %1029  ;;  %1043 = vpow2.f32 %v278_v43 }
  0xbf   :  { %v1032_v54 = vpop.eup %1031  ;;  %v111_v57 = vmul.f32 1.442695, %v94_v49  ;;  %v280_v28 = vmul.f32 1.442695, %v263_v50  ;;  %v128_v58 = vsel %vm52_vm0, %v1030_v53, 0.0 }
  0xc0   :  { %295 = vadd.xlane.f32.xlu0 %v294_v37  ;;  %129 = vadd.xlane.f32.xlu1 %v128_v58  ;;  %v1428_v59 = vpop.xlane.xlu0 %72  ;;  %v1430_v60 = vpop.xlane.xlu1 %241  ;;  %v297_v63 = vsel %vm52_vm0, %v1032_v54, 0.0 }
  0xc1   :  { %1045 = vpow2.f32 %v111_v57  ;;  %v95_v39 = vsub.f32 %v1250_v22, %v1428_v59  ;;  %v264_v62 = vsub.f32 %v1254_v25, %v1430_v60 }
  0xc2   :  { %v1034_v1 = vpop.eup %1033  ;;  %1047 = vpow2.f32 %v280_v28 }
  0xc3   :  { %v1036_v2 = vpop.eup %1035  ;;  %v113_v3 = vmul.f32 1.442695, %v95_v39  ;;  %v282_v7 = vmul.f32 1.442695, %v264_v62  ;;  %v131_v11 = vsel %vm52_vm0, %v1034_v1, 0.0 }
  0xc4   :  { %298 = vadd.xlane.f32.xlu1 %v297_v63  ;;  %132 = vadd.xlane.f32.xlu0 %v131_v11  ;;  %v1438_v15 = vpop.xlane.xlu0 %75  ;;  %v1440_v16 = vpop.xlane.xlu1 %244  ;;  %v300_v31 = vsel %vm52_vm0, %v1036_v2, 0.0 }
  0xc5   :  { %1049 = vpow2.f32 %v113_v3  ;;  %v96_v23 = vsub.f32 %v1256_v26, %v1438_v15  ;;  %v265_v30 = vsub.f32 %v1258_v27, %v1440_v16 }
  0xc6   :  { %v1038_v40 = vpop.eup %1037  ;;  %1051 = vpow2.f32 %v282_v7 }
  0xc7   :  { %v1040_v41 = vpop.eup %1039  ;;  %v115_v42 = vmul.f32 1.442695, %v96_v23  ;;  %v284_v43 = vmul.f32 1.442695, %v265_v30  ;;  %v134_v44 = vsel %vm52_vm0, %v1038_v40, 0.0 }
  0xc8   :  { %301 = vadd.xlane.f32.xlu1 %v300_v31  ;;  %135 = vadd.xlane.f32.xlu0 %v134_v44  ;;  %v1448_v49 = vpop.xlane.xlu0 %78  ;;  %v1450_v50 = vpop.xlane.xlu1 %247  ;;  %v303_v37 = vsel %vm52_vm0, %v1040_v41, 0.0 }
  0xc9   :  { %1053 = vpow2.f32 %v115_v42  ;;  %v97_v26 = vsub.f32 %v1334_v45, %v1448_v49  ;;  %v266_v27 = vsub.f32 %v1336_v46, %v1450_v50 }
  0xca   :  { %v1042_v53 = vpop.eup %1041  ;;  %1055 = vpow2.f32 %v284_v43 }
  0xcb   :  { %v1044_v54 = vpop.eup %1043  ;;  %v117_v57 = vmul.f32 1.442695, %v97_v26  ;;  %v286_v28 = vmul.f32 1.442695, %v266_v27  ;;  %v137_v58 = vsel %vm52_vm0, %v1042_v53, 0.0 }
  0xcc   :  { %304 = vadd.xlane.f32.xlu1 %v303_v37  ;;  %138 = vadd.xlane.f32.xlu0 %v137_v58  ;;  %v1458_v39 = vpop.xlane.xlu0 %81  ;;  %v1460_v62 = vpop.xlane.xlu1 %250  ;;  %v306_v2 = vsel %vm52_vm0, %v1044_v54, 0.0 }
  0xcd   :  { %1057 = vpow2.f32 %v117_v57  ;;  %v98_v63 = vsub.f32 %v1347_v61, %v1458_v39  ;;  %v267_v1 = vsub.f32 %v1349_v38, %v1460_v62 }
  0xce   :  { %v1046_v3 = vpop.eup %1045  ;;  %1059 = vpow2.f32 %v286_v28 }
  0xcf   :  { %v1048_v7 = vpop.eup %1047  ;;  %v119_v11 = vmul.f32 1.442695, %v98_v63  ;;  %v288_v23 = vmul.f32 1.442695, %v267_v1  ;;  %v140_v30 = vsel %vm52_vm0, %v1046_v3, 0.0 }
  0xd0   :  { %307 = vadd.xlane.f32.xlu1 %v306_v2  ;;  %141 = vadd.xlane.f32.xlu0 %v140_v30  ;;  %v1468_v31 = vpop.xlane.xlu0 %84  ;;  %v1470_v40 = vpop.xlane.xlu1 %253  ;;  %v309_v43 = vsel %vm52_vm0, %v1048_v7, 0.0 }
  0xd1   :  { %1061 = vpow2.f32 %v119_v11  ;;  %v99_v41 = vsub.f32 %v1357_v34, %v1468_v31  ;;  %v268_v42 = vsub.f32 %v1359_v35, %v1470_v40 }
  0xd2   :  { %v1050_v44 = vpop.eup %1049  ;;  %1063 = vpow2.f32 %v288_v23 }
  0xd3   :  { %v1052_v26 = vpop.eup %1051  ;;  %v121_v27 = vmul.f32 1.442695, %v99_v41  ;;  %v290_v37 = vmul.f32 1.442695, %v268_v42  ;;  %v143_v53 = vsel %vm52_vm0, %v1050_v44, 0.0 }
  0xd4   :  { %310 = vadd.xlane.f32.xlu1 %v309_v43  ;;  %144 = vadd.xlane.f32.xlu0 %v143_v53  ;;  %v1478_v54 = vpop.xlane.xlu0 %87  ;;  %v1480_v57 = vpop.xlane.xlu1 %256  ;;  %v312_v63 = vsel %vm52_vm0, %v1052_v26, 0.0 }
  0xd5   :  { %1598 = vst [vmem:[#allocation13_spill] sm:$0xff] %v1480_v57  ;;  %1065 = vpow2.f32 %v121_v27  ;;  %v100_v28 = vsub.f32 %v1369_v36, %v1478_v54  ;;  %v269_v58 = vsub.f32 %v1371_v52, %v1480_v57 }
  0xd6   :  { %v1054_v1 = vpop.eup %1053  ;;  %1067 = vpow2.f32 %v290_v37 }
  0xd7   :  { %v1056_v2 = vpop.eup %1055  ;;  %v123_v3 = vmul.f32 1.442695, %v100_v28  ;;  %v292_v7 = vmul.f32 1.442695, %v269_v58  ;;  %v146_v11 = vsel %vm52_vm0, %v1054_v1, 0.0 }
  0xd8   :  { %313 = vadd.xlane.f32.xlu1 %v312_v63  ;;  %147 = vadd.xlane.f32.xlu0 %v146_v11  ;;  %v315_v23 = vsel %vm52_vm0, %v1056_v2, 0.0 }
  0xd9   :  { %1069 = vpow2.f32 %v123_v3 }
  0xda   :  { %v1058_v30 = vpop.eup %1057  ;;  %1071 = vpow2.f32 %v292_v7 }
  0xdb   :  { %v1060_v41 = vpop.eup %1059  ;;  %v149_v42 = vsel %vm52_vm0, %v1058_v30, 0.0 }
  0xdc   :  { %316 = vadd.xlane.f32.xlu1 %v315_v23  ;;  %150 = vadd.xlane.f32.xlu0 %v149_v42  ;;  %v318_v43 = vsel %vm52_vm0, %v1060_v41, 0.0 }
  0xde   :  { %v1062_v44 = vpop.eup %1061 }
  0xdf   :  { %v1064_v26 = vpop.eup %1063  ;;  %v152_v27 = vsel %vm52_vm0, %v1062_v44, 0.0 }
  0xe0   :  { %319 = vadd.xlane.f32.xlu1 %v318_v43  ;;  %153 = vadd.xlane.f32.xlu0 %v152_v27  ;;  %v321_v37 = vsel %vm52_vm0, %v1064_v26, 0.0 }
  0xe2   :  { %v1066_v53 = vpop.eup %1065 }
  0xe3   :  { %v1068_v28 = vpop.eup %1067  ;;  %v155_v58 = vsel %vm52_vm0, %v1066_v53, 0.0 }
  0xe4   :  { %322 = vadd.xlane.f32.xlu1 %v321_v37  ;;  %156 = vadd.xlane.f32.xlu0 %v155_v58  ;;  %v324_v63 = vsel %vm52_vm0, %v1068_v28, 0.0 }
  0xe6   :  { %v1070_v1 = vpop.eup %1069 }
  0xe7   :  { %v1072_v2 = vpop.eup %1071  ;;  %v158_v3 = vsel %vm52_vm0, %v1070_v1, 0.0 }
  0xe8   :  { %325 = vadd.xlane.f32.xlu1 %v324_v63  ;;  %159 = vadd.xlane.f32.xlu0 %v158_v3  ;;  %v327_v7 = vsel %vm52_vm0, %v1072_v2, 0.0 }
  0xec   :  { %328 = vadd.xlane.f32.xlu1 %v327_v7 }
 0x145   :  { %v127_v11 = vpop.xlane.xlu0 %126 }
 0x146   :  { %1073 = vlog2.f32 %v127_v11 }
 0x149   :  { %v130_v23 = vpop.xlane.xlu1 %129  ;;  %v296_v30 = vpop.xlane.xlu0 %295 }
 0x14a   :  { %1075 = vlog2.f32 %v296_v30 }
 0x14d   :  { %v299_v41 = vpop.xlane.xlu1 %298  ;;  %v133_v42 = vpop.xlane.xlu0 %132 }
 0x14e   :  { %1077 = vlog2.f32 %v299_v41 }
 0x14f   :  { %1079 = vlog2.f32 %v130_v23 }
 0x150   :  { %1081 = vlog2.f32 %v133_v42 }
 0x151   :  { %v302_v43 = vpop.xlane.xlu1 %301  ;;  %v136_v44 = vpop.xlane.xlu0 %135 }
 0x152   :  { %1083 = vlog2.f32 %v302_v43 }
 0x153   :  { %1085 = vlog2.f32 %v136_v44  ;;  %v1074_v28 = vpop.eup %1073 }
 0x154   :  { %v162_v42 = vmul.f32 0.6931472, %v1074_v28 }
 0x155   :  { %v305_v26 = vpop.xlane.xlu1 %304  ;;  %v139_v27 = vpop.xlane.xlu0 %138 }
 0x156   :  { %1087 = vlog2.f32 %v305_v26 }
 0x157   :  { %1089 = vlog2.f32 %v139_v27  ;;  %v1076_v58 = vpop.eup %1075 }
 0x158   :  { %v331_v11 = vmul.f32 0.6931472, %v1076_v58 }
 0x159   :  { %v308_v37 = vpop.xlane.xlu1 %307  ;;  %v142_v53 = vpop.xlane.xlu0 %141 }
 0x15a   :  { %1091 = vlog2.f32 %v308_v37  ;;  %v354_v37 = vadd.f32 %v331_v11, %v1379_v56  ;;  %v997_v11 = vpop.f32.mrf.mxu0 }
 0x15b   :  { %1093 = vlog2.f32 %v142_v53  ;;  %v1078_v63 = vpop.eup %1077 }
 0x15c   :  { %v1080_v1 = vpop.eup %1079  ;;  %v333_v30 = vmul.f32 0.6931472, %v1078_v63  ;;  %v185_v63 = vadd.f32 %v162_v42, %v1377_v55 }
 0x15d   :  { %v311_v2 = vpop.xlane.xlu1 %310  ;;  %v145_v3 = vpop.xlane.xlu0 %144  ;;  %v164_v44 = vmul.f32 0.6931472, %v1080_v1 }
 0x15e   :  { %v1082_v7 = vpop.eup %1081  ;;  %1095 = vlog2.f32 %v311_v2  ;;  %v355_v36 = vadd.f32 %v333_v30, %v1387_v33 }
 0x15f   :  { %v1084_v23 = vpop.eup %1083  ;;  %1097 = vlog2.f32 %v145_v3  ;;  %v166_v26 = vmul.f32 0.6931472, %v1082_v7  ;;  %v186_v28 = vadd.f32 %v164_v44, %v1385_v32 }
 0x160   :  { %v1086_v41 = vpop.eup %1085  ;;  %v335_v43 = vmul.f32 0.6931472, %v1084_v23 }
 0x161   :  { %v314_v27 = vpop.xlane.xlu1 %313  ;;  %v148_v52 = vpop.xlane.xlu0 %147  ;;  %v168_v58 = vmul.f32 0.6931472, %v1086_v41  ;;  %v187_v1 = vadd.f32 %v166_v26, %v1393_v51  ;;  %v1509_v51 = vsub.f32 %v1218_v4, %v185_v63 }
 0x162   :  { %1099 = vlog2.f32 %v314_v27  ;;  %v356_v57 = vadd.f32 %v335_v43, %v1395_v0  ;;  %v366_v27 = vsub.f32 %v1220_v5, %v354_v37 }
 0x163   :  { %v1088_v53 = vpop.eup %1087  ;;  %1101 = vlog2.f32 %v148_v52  ;;  %v188_v0 = vadd.f32 %v168_v58, %v1401_v8  ;;  %v367_v52 = vsub.f32 %v1228_v10, %v355_v36  ;;  %v1516_v43 = vsub.f32 %v1230_v12, %v187_v1 }
 0x164   :  { %v337_v2 = vmul.f32 0.6931472, %v1088_v53  ;;  %v1090_v3 = vpop.eup %1089  ;;  %v368_v55 = vsub.f32 %v1232_v13, %v356_v57  ;;  %v789_v13 = vpop.f32.mrf.mxu0  ;;  %v848_v57 = vsub.f32 %v1509_v51, %v366_v27 }
 0x165   :  { %v317_v7 = vpop.xlane.xlu1 %316  ;;  %v151_v23 = vpop.xlane.xlu0 %150  ;;  %v170_v32 = vmul.f32 0.6931472, %v1090_v3  ;;  %v1522_v26 = vsub.f32 %v1234_v14, %v188_v0 }
 0x166   :  { %v357_v56 = vadd.f32 %v337_v2, %v1403_v9  ;;  %1103 = vlog2.f32 %v317_v7  ;;  %v1512_v9 = vsub.f32 %v1222_v6, %v186_v28  ;;  %v850_v6 = vsub.f32 %v1516_v43, %v368_v55  ;;  %v1000_v53 = vpop.f32.mrf.mxu0 }
 0x167   :  { %v1092_v33 = vpop.eup %1091  ;;  %1105 = vlog2.f32 %v151_v23  ;;  %v189_v12 = vadd.f32 %v170_v32, %v1409_v24  ;;  %v860_v14 = vmul.f32 0.11111111, %v848_v57 }
 0x168   :  { %v1094_v30 = vpop.eup %1093  ;;  %v339_v41 = vmul.f32 0.6931472, %v1092_v33  ;;  %v369_v5 = vsub.f32 %v1240_v17, %v357_v56  ;;  %v849_v4 = vsub.f32 %v1512_v9, %v367_v52  ;;  %v862_v56 = vmul.f32 0.11111111, %v850_v6 }
 0x169   :  { %v172_v42 = vmul.f32 0.6931472, %v1094_v30  ;;  %v320_v8 = vpop.xlane.xlu1 %319  ;;  %v154_v10 = vpop.xlane.xlu0 %153  ;;  %v1533_v52 = vsub.f32 %v1242_v18, %v189_v12 }
 0x16a   :  { %v358_v36 = vadd.f32 %v339_v41, %v1411_v29  ;;  %1107 = vlog2.f32 %v320_v8  ;;  %v851_v63 = vsub.f32 %v1522_v26, %v369_v5  ;;  %v861_v23 = vmul.f32 0.11111111, %v849_v4  ;;  %v1006_v12 = vpop.f32.mrf.mxu1 }
 0x16b   :  { %v1096_v44 = vpop.eup %1095  ;;  %1109 = vlog2.f32 %v154_v10  ;;  %v190_v29 = vadd.f32 %v172_v42, %v1418_v47  ;;  %v799_v47 = vpop.f32.mrf.mxu0  ;;  %v872_v41 = vmul.f32 %v860_v14, %v789_v13 }
 0x16c   :  { %v1098_v17 = vpop.eup %1097  ;;  %v341_v37 = vmul.f32 0.6931472, %v1096_v44  ;;  %v370_v1 = vsub.f32 %v1244_v19, %v358_v36  ;;  %v873_v8 = vmul.f32 %v997_v11, %v861_v23  ;;  %v874_v10 = vmul.f32 %v862_v56, %v799_v47 }
 0x16d   :  { %v174_v58 = vmul.f32 0.6931472, %v1098_v17  ;;  %v323_v2 = vpop.xlane.xlu1 %322  ;;  %v157_v3 = vpop.xlane.xlu0 %156  ;;  %v1536_v30 = vsub.f32 %v1246_v20, %v190_v29 }
 0x16e   :  { %v359_v28 = vadd.f32 %v341_v37, %v1420_v48  ;;  %1111 = vlog2.f32 %v323_v2  ;;  %v863_v48 = vmul.f32 0.11111111, %v851_v63  ;;  %v852_v5 = vsub.f32 %v1533_v52, %v370_v1 }
 0x16f   :  { %v1100_v7 = vpop.eup %1099  ;;  %1113 = vlog2.f32 %v157_v3  ;;  %v191_v27 = vadd.f32 %v174_v58, %v1428_v59  ;;  %v885_v29 = vsub.f32 %v873_v8, %v1512_v9  ;;  %v886_v2 = vsub.f32 %v874_v10, %v1516_v43 }
 0x170   :  { %v1102_v24 = vpop.eup %1101  ;;  %v343_v33 = vmul.f32 0.6931472, %v1100_v7  ;;  %v371_v0 = vsub.f32 %v1248_v21, %v359_v28  ;;  %v1003_v21 = vpop.f32.mrf.mxu0  ;;  %v875_v4 = vmul.f32 %v1000_v53, %v863_v48  ;;  %v864_v11 = vmul.f32 0.11111111, %v852_v5  ;;  %v1122_v53 = vld [vmem:[#allocation2 + $0x78] sm:$0xff] }
 0x171   :  { %v176_v55 = vmul.f32 0.6931472, %v1102_v24  ;;  %v326_v19 = vpop.xlane.xlu1 %325  ;;  %v160_v32 = vpop.xlane.xlu0 %159  ;;  %v1543_v44 = vsub.f32 %v1250_v22, %v191_v27  ;;  %v897_v43 = vsel %vm52_vm0, %v885_v29, 0.0 }
 0x172   :  { %v360_v42 = vadd.f32 %v343_v33, %v1430_v60  ;;  %1115 = vlog2.f32 %v326_v19  ;;  %v853_v18 = vsub.f32 %v1536_v30, %v371_v0  ;;  %v809_v63 = vpop.f32.mrf.mxu0  ;;  %v887_v23 = vsub.f32 %v875_v4, %v1522_v26  ;;  %v819_v24 = vpop.f32.mrf.mxu1 }
 0x173   :  { %v1104_v59 = vpop.eup %1103  ;;  %1117 = vlog2.f32 %v160_v32  ;;  %v192_v57 = vadd.f32 %v176_v55, %v1438_v15  ;;  %v884_v15 = vsub.f32 %v872_v41, %v1509_v51  ;;  %v876_v56 = vmul.f32 %v864_v11, %v809_v63 }
 0x174   :  { %v1106_v36 = vpop.eup %1105  ;;  %v345_v20 = vmul.f32 0.6931472, %v1104_v59  ;;  %v372_v13 = vsub.f32 %v1254_v25, %v360_v42  ;;  %v865_v58 = vmul.f32 0.11111111, %v853_v18  ;;  %v1121_v25 = vld [vmem:[#allocation2 + $0x68] sm:$0xff]  ;;  %v1009_v32 = vpop.f32.mrf.mxu1  ;;  %v901_v10 = vsel %vm52_vm0, %v887_v23, 0.0 }
 0x175   :  { %v178_v60 = vmul.f32 0.6931472, %v1106_v36  ;;  %v329_v6 = vpop.xlane.xlu1 %328  ;;  %v1551_v3 = vsub.f32 %v1121_v25, %v192_v57  ;;  %v896_v33 = vsel %vm52_vm0, %v884_v15, 0.0 }
 0x176   :  { %v361_v17 = vadd.f32 %v345_v20, %v1440_v16  ;;  %1119 = vlog2.f32 %v329_v6  ;;  %v854_v37 = vsub.f32 %v1543_v44, %v372_v13  ;;  %v877_v0 = vmul.f32 %v1003_v21, %v865_v58  ;;  %v829_v6 = vpop.f32.mrf.mxu1 }
 0x177   :  { %v1108_v22 = vpop.eup %1107  ;;  %v193_v14 = vadd.f32 %v178_v60, %v1448_v49  ;;  %v899_v49 = vsel %vm52_vm0, %v886_v2, 0.0  ;;  %v898_v8 = vadd.f32 %v897_v43, %v896_v33  ;;  %v888_v21 = vsub.f32 %v876_v56, %v1533_v52 }
 0x178   :  { %v373_v28 = vsub.f32 %v1122_v53, %v361_v17  ;;  %v1110_v16 = vpop.eup %1109  ;;  %v347_v1 = vmul.f32 0.6931472, %v1108_v22  ;;  %v866_v7 = vmul.f32 0.11111111, %v854_v37 }
 0x179   :  { %v180_v9 = vmul.f32 0.6931472, %v1110_v16  ;;  %v205_v5 = vsub.f32 %v1334_v45, %v193_v14  ;;  %v900_v60 = vadd.f32 %v899_v49, %v898_v8  ;;  %v903_v37 = vsel %vm52_vm0, %v888_v21, 0.0 }
 0x17a   :  { %v855_v51 = vsub.f32 %v1551_v3, %v373_v28  ;;  %v362_v47 = vadd.f32 %v347_v1, %v1450_v50  ;;  %v878_v42 = vmul.f32 %v866_v7, %v819_v24 }
 0x17b   :  { %v1112_v27 = vpop.eup %1111  ;;  %v194_v48 = vadd.f32 %v180_v9, %v1458_v39  ;;  %v889_v39 = vsub.f32 %v877_v0, %v1536_v30  ;;  %v902_v52 = vadd.f32 %v901_v10, %v900_v60 }
 0x17c   :  { %v1114_v55 = vpop.eup %1113  ;;  %v349_v19 = vmul.f32 0.6931472, %v1112_v27  ;;  %v867_v26 = vmul.f32 0.11111111, %v855_v51  ;;  %v374_v59 = vsub.f32 %v1336_v46, %v362_v47 }
 0x17d   :  { %v182_v41 = vmul.f32 0.6931472, %v1114_v55  ;;  %v206_v45 = vsub.f32 %v1347_v61, %v194_v48  ;;  %v905_v29 = vsel %vm52_vm0, %v889_v39, 0.0  ;;  %v1012_v61 = vpop.f32.mrf.mxu1  ;;  %v904_v25 = vadd.f32 %v903_v37, %v902_v52 }
 0x17e   :  { %v363_v50 = vadd.f32 %v349_v19, %v1460_v62  ;;  %v879_v57 = vmul.f32 %v1006_v12, %v867_v26  ;;  %v856_v20 = vsub.f32 %v205_v5, %v374_v59  ;;  %v890_v62 = vsub.f32 %v878_v42, %v1543_v44 }
 0x17f   :  { %v1116_v18 = vpop.eup %1115  ;;  %v195_v36 = vadd.f32 %v182_v41, %v1468_v31  ;;  %v906_v7 = vadd.f32 %v905_v29, %v904_v25  ;;  %v839_v23 = vpop.f32.mrf.mxu1 }
 0x180   :  { %v1118_v13 = vpop.eup %1117  ;;  %v351_v4 = vmul.f32 0.6931472, %v1116_v18  ;;  %v375_v46 = vsub.f32 %v1349_v38, %v363_v50  ;;  %v868_v11 = vmul.f32 0.11111111, %v856_v20  ;;  %v891_v15 = vsub.f32 %v879_v57, %v1551_v3 }
 0x181   :  { %v184_v17 = vmul.f32 0.6931472, %v1118_v13  ;;  %v207_v38 = vsub.f32 %v1357_v34, %v195_v36  ;;  %v907_v53 = vsel %vm52_vm0, %v890_v62, 0.0  ;;  %v1600_v34 = vld [vmem:[#allocation11_spill] sm:$0xff] }
 0x182   :  { %v364_v31 = vadd.f32 %v351_v4, %v1470_v40  ;;  %v857_v30 = vsub.f32 %v206_v45, %v375_v46  ;;  %v880_v58 = vmul.f32 %v868_v11, %v829_v6  ;;  %v1599_v40 = vld [vmem:[#allocation13_spill] sm:$0xff]  ;;  %v909_v3 = vsel %vm52_vm0, %v891_v15, 0.0 }
 0x183   :  { %v1120_v12 = vpop.eup %1119  ;;  %v196_v63 = vadd.f32 %v184_v17, %v1478_v54  ;;  %v1601_v54 = vld [vmem:[#allocation12_spill] sm:$0xff]  ;;  %v908_v27 = vadd.f32 %v907_v53, %v906_v7 }
 0x184   :  { %v353_v22 = vmul.f32 0.6931472, %v1120_v12  ;;  %v869_v44 = vmul.f32 0.11111111, %v857_v30  ;;  %v376_v2 = vsub.f32 %v1359_v35, %v364_v31  ;;  %v892_v14 = vsub.f32 %v880_v58, %v205_v5 }
 0x185   :  { %v208_v56 = vsub.f32 %v1600_v34, %v196_v63  ;;  %v910_v47 = vadd.f32 %v909_v3, %v908_v27 }
 0x186   :  { %v365_v28 = vadd.f32 %v353_v22, %v1599_v40  ;;  %v881_v16 = vmul.f32 %v1009_v32, %v869_v44  ;;  %v858_v1 = vsub.f32 %v207_v38, %v376_v2  ;;  %v911_v35 = vsel %vm52_vm0, %v892_v14, 0.0 }
 0x187   :  { %v912_v48 = vadd.f32 %v911_v35, %v910_v47 }
 0x188   :  { %v893_v9 = vsub.f32 %v881_v16, %v206_v45  ;;  %v377_v51 = vsub.f32 %v1601_v54, %v365_v28  ;;  %v870_v24 = vmul.f32 0.11111111, %v858_v1 }
 0x18a   :  { %v859_v43 = vsub.f32 %v208_v56, %v377_v51  ;;  %v882_v33 = vmul.f32 %v870_v24, %v839_v23  ;;  %v913_v0 = vsel %vm52_vm0, %v893_v9, 0.0 }
 0x18b   :  { %v914_v32 = vadd.f32 %v913_v0, %v912_v48 }
 0x18c   :  { %v871_v55 = vmul.f32 0.11111111, %v859_v43  ;;  %v894_v49 = vsub.f32 %v882_v33, %v207_v38 }
 0x18e   :  { %v883_v19 = vmul.f32 %v1012_v61, %v871_v55  ;;  %v915_v26 = vsel %vm52_vm0, %v894_v49, 0.0 }
 0x18f   :  { %v916_v42 = vadd.f32 %v915_v26, %v914_v32 }
 0x190   :  { %v895_v41 = vsub.f32 %v883_v19, %v208_v56 }
 0x192   :  { %v917_v5 = vsel %vm52_vm0, %v895_v41, 0.0 }
 0x193   :  { %v918_v59 = vadd.f32 %v917_v5, %v916_v42 }
 0x195   :  { %v919_v8 = vrot.slane %v918_v59, 4 }
 0x197   :  { %v920_v10 = vadd.f32 %v919_v8, %v918_v59 }
 0x199   :  { %v921_v50 = vrot.slane %v920_v10, 2 }
 0x19b   :  { %v922_v21 = vadd.f32 %v921_v50, %v920_v10 }
 0x19d   :  { %v923_v18 = vrot.slane %v922_v21, 1 }
 0x19f   :  { %v924_v36 = vadd.f32 %v923_v18, %v922_v21 }
 0x1a1   :  { %926 = vst.msk [vmem:[#allocation7] sm:$0x1] %vm925_vm5, %v924_v36 }
 0x1a2   :  { %1174 = shalt.err (!%p1171_p0)
}
 0x1a3   :  { %936 = dma.vmem_to_hbm [thread:$0]  %s934_s1, 16, %s1592_s2, [#allocation4]  }
 0x1a4   :  { %1187 = dma.done.wait [#allocation4], 16  }
 0x1a5   :  { %1188 = vsyncadd [#allocation4], 4294967280 }
 0x1a6   :  { %940 = vsyncpa [#allocation3], 1 }
 0x1a7   :  { %941 = vsyncpa [#allocation6], 1 }
 0x1a8   :  { %942 = vsyncpa [#allocation4], 1 }

</bundles_post_ra>
